<compile_context>
chip_gen: v6e
topology: v6e:2x2x1
jax: 0.10.0
libtpu: 0.0.40
codegen_flags: <defaults>
</compile_context>

<pallas_src>
import functools

import jax
import jax.numpy as jnp
from jax import lax
from jax.experimental import pallas as pl
from jax.experimental.pallas import tpu as pltpu

NEG_SLOPE = 0.2
MASK_VALUE = -1e30          # python float; stored as bf16 additive mask
DST_TILE_TARGET = 256       # destination-row tile target (multiple of 8)


def _row_tile(n, target=DST_TILE_TARGET):
    """Largest row tile <= target that divides n and is a multiple of 8."""
    if n <= target:
        return n
    t = target
    while t >= 8:
        if n % t == 0 and t % 8 == 0:
            return t
        t -= 8
    return n  # fall back to a single (full) tile


# ---------------------------------------------------------------------------
# Kernel 1: feature projection + attention dot products (tiled over rows)
# ---------------------------------------------------------------------------
def _gat_project_kernel(x_ref, w_ref, ar_ref, alt_ref, z_ref, er_ref, elt_ref):
    # x_ref  : (T, F_in) f32      w_ref  : (F_in, H*D) bf16
    # ar_ref : (H*D, H)  bf16     alt_ref: (H, H*D)    bf16
    # z_ref  : (T, H*D)  bf16     er_ref : (T, H) f32  elt_ref: (H, T) f32
    x = x_ref[...].astype(jnp.bfloat16)
    z = jnp.dot(x, w_ref[...], preferred_element_type=jnp.float32)      # (T, H*D)
    z_bf = z.astype(jnp.bfloat16)
    z_ref[...] = z_bf
    # er[n, h] = <z_h[n], attn_r[h]>   (dst scores, one column per head)
    er_ref[...] = jnp.dot(z_bf, ar_ref[...],
                          preferred_element_type=jnp.float32)            # (T, H)
    # el_t[h, n] = <z_h[n], attn_l[h]> (src scores, lanes on node axis)
    elt_ref[...] = lax.dot_general(alt_ref[...], z_bf,
                                   (((1,), (1,)), ((), ())),
                                   preferred_element_type=jnp.float32)   # (H, T)


# ---------------------------------------------------------------------------
# Kernel 2: masked softmax attention + aggregation (grid over dst-row tiles)
# ---------------------------------------------------------------------------
def _gat_attend_kernel(er_ref, elt_ref, z_ref, mask_ref, b_ref, o_ref, *,
                       num_heads, out_feats, negative_slope, apply_elu):
    # er_ref : (T, H) f32        elt_ref : (H, N) f32
    # z_ref  : (N, H*D) bf16     mask_ref: (T, N) bf16 (0 on edges, -1e30 off)
    # b_ref  : (1, H*D) f32      o_ref   : (T, H*D) f32 (heads concatenated)
    er = er_ref[...]
    elt = elt_ref[...]
    mask = mask_ref[...].astype(jnp.float32)
    z_bf = z_ref[...]
    bias = b_ref[...]
    n_src = z_bf.shape[0]
    ones_src = jnp.ones((n_src, 1), jnp.bfloat16)        # hoisted out of head loop

    for h in range(num_heads):                           # static unroll, H small
        d0 = h * out_feats
        d1 = d0 + out_feats
        e = er[:, h:h + 1] + elt[h:h + 1, :]             # (T, N) raw scores
        e = jnp.maximum(e, negative_slope * e) + mask    # leaky-relu + edge mask
        m = jnp.max(e, axis=1, keepdims=True)            # (T, 1) row max (XLU)
        p = jnp.exp(e - m)                               # (T, N) unnormalized attn
        p_bf = p.astype(jnp.bfloat16)
        # softmax denominator on the MXU instead of a second XLU row reduction
        denom = jnp.dot(p_bf, ones_src, preferred_element_type=jnp.float32)   # (T, 1)
        agg = jnp.dot(p_bf, z_ref[:, d0:d1],
                      preferred_element_type=jnp.float32)                     # (T, D)
        out_h = agg * pl.reciprocal(denom, approx=True) + bias[:, d0:d1]
        if apply_elu:
            out_h = jnp.where(out_h > 0.0, out_h,
                              jnp.exp(jnp.minimum(out_h, 0.0)) - 1.0)
        o_ref[:, d0:d1] = out_h                          # static lane-slice store


# ---------------------------------------------------------------------------
# Per-layer wrapper
# ---------------------------------------------------------------------------
def gat_conv_pallas(x, layer, mask, apply_elu):
    n, f_in = x.shape
    num_heads, out_feats = layer["num_heads"], layer["out_feats"]
    hd = num_heads * out_feats
    tile = _row_tile(n)
    grid = (pl.cdiv(n, tile),)
    par = pltpu.CompilerParams(dimension_semantics=("parallel",))

    # ---- 1) projection (z, er, el_t) ------------------------------------
    z_bf, er, elt = pl.pallas_call(
        _gat_project_kernel,
        grid=grid,
        in_specs=[
            pl.BlockSpec((tile, f_in), lambda i: (i, 0)),
            pl.BlockSpec((f_in, hd), lambda i: (0, 0)),
            pl.BlockSpec((hd, num_heads), lambda i: (0, 0)),
            pl.BlockSpec((num_heads, hd), lambda i: (0, 0)),
        ],
        out_specs=(
            pl.BlockSpec((tile, hd), lambda i: (i, 0)),
            pl.BlockSpec((tile, num_heads), lambda i: (i, 0)),
            pl.BlockSpec((num_heads, tile), lambda i: (0, i)),
        ),
        out_shape=(
            jax.ShapeDtypeStruct((n, hd), jnp.bfloat16),
            jax.ShapeDtypeStruct((n, num_heads), jnp.float32),
            jax.ShapeDtypeStruct((num_heads, n), jnp.float32),
        ),
        compiler_params=par,
    )(x, layer["W"], layer["Ar_blk"], layer["Alt_blk"])

    # ---- 2) attention + aggregation (dst-row tiled, mask streamed) ------
    kernel = functools.partial(
        _gat_attend_kernel,
        num_heads=num_heads, out_feats=out_feats,
        negative_slope=NEG_SLOPE, apply_elu=apply_elu)
    cost = pl.CostEstimate(
        flops=int(2 * num_heads * n * n * (out_feats + 1)),
        transcendentals=int(num_heads * n * n),
        bytes_accessed=int(n * n * 2 + 2 * n * hd * 2 + n * hd * 4))
    out = pl.pallas_call(
        kernel,
        grid=grid,
        in_specs=[
            pl.BlockSpec((tile, num_heads), lambda i: (i, 0)),   # er (dst tile)
            pl.BlockSpec((num_heads, n), lambda i: (0, 0)),      # el_t (resident)
            pl.BlockSpec((n, hd), lambda i: (0, 0)),             # z (resident)
            pl.BlockSpec((tile, n), lambda i: (i, 0)),           # mask strip (streamed)
            pl.BlockSpec((1, hd), lambda i: (0, 0)),             # bias
        ],
        out_specs=pl.BlockSpec((tile, hd), lambda i: (i, 0)),
        out_shape=jax.ShapeDtypeStruct((n, hd), jnp.float32),
        compiler_params=pltpu.CompilerParams(
            dimension_semantics=("parallel",),
            vmem_limit_bytes=48 * 1024 * 1024),
        cost_estimate=cost,
    )(er, elt, z_bf, mask, layer["bias2d"])
    return out


# ---------------------------------------------------------------------------
# Parameter preprocessing (done once, outside the kernels)
# ---------------------------------------------------------------------------
def _block_diag_cols(a):   # (H, D) -> (H*D, H); out[h*D+d, h] = a[h, d]
    h, d = a.shape
    eye = jnp.eye(h, dtype=a.dtype)
    return (a[:, :, None] * eye[:, None, :]).reshape(h * d, h)


def _block_diag_rows(a):   # (H, D) -> (H, H*D); out[h, h*D+d] = a[h, d]
    h, d = a.shape
    eye = jnp.eye(h, dtype=a.dtype)
    return (eye[:, :, None] * a[None, :, :]).reshape(h, h * d)


def prepare_layer(raw):
    h, d = raw["attn_l"].shape
    return dict(
        num_heads=h, out_feats=d,
        W=raw["W"].astype(jnp.bfloat16),
        Ar_blk=_block_diag_cols(raw["attn_r"]).astype(jnp.bfloat16),
        Alt_blk=_block_diag_rows(raw["attn_l"]).astype(jnp.bfloat16),
        bias2d=raw["bias"].reshape(1, h * d).astype(jnp.float32),
    )


def gat_forward(adj, x, layer_params, num_layers):
    assert len(layer_params) == num_layers + 1
    # bf16 additive edge mask, computed once per forward (shared by all layers)
    mask = jnp.where(adj > 0.0, 0.0, MASK_VALUE).astype(jnp.bfloat16)
    layers = [prepare_layer(p) for p in layer_params]
    h = x
    for l in range(num_layers):
        # kernel emits (N, H*D) == torch .flatten(1) layout (heads on lanes)
        h = gat_conv_pallas(h, layers[l], mask, apply_elu=True)
    out = gat_conv_pallas(h, layers[-1], mask, apply_elu=False)
    h_last, c = layers[-1]["num_heads"], layers[-1]["out_feats"]
    return out.reshape(out.shape[0], h_last, c).mean(axis=1)   # .mean(1)


# ---------------------------------------------------------------------------
# Pure-JAX reference (mirrors DGL GATConv semantics) for correctness checking
# ---------------------------------------------------------------------------
def _gat_conv_ref(h, raw, adj, activation):
    w, a_l, a_r, b = raw["W"], raw["attn_l"], raw["attn_r"], raw["bias"]
    num_heads, d = a_l.shape
    n = h.shape[0]
    z = (h @ w).reshape(n, num_heads, d)                 # (N, H, D)
    el = jnp.einsum("nhd,hd->hn", z, a_l)                # (H, N) src
    er = jnp.einsum("nhd,hd->hn", z, a_r)                # (H, N) dst
    e = er[:, :, None] + el[:, None, :]                  # (H, N_dst, N_src)
    e = jnp.where(e >= 0.0, e, NEG_SLOPE * e)
    e = jnp.where(adj[None] > 0.0, e, MASK_VALUE)
    alpha = jax.nn.softmax(e, axis=2)
    out = jnp.einsum("hds,shf->dhf", alpha, z)           # (N, H, D)
    out = out + b.reshape(1, num_heads, d)
    if activation is not None:
        out = activation(out)
    return out


def gat_forward_ref(adj, x, layer_params, num_layers):
    h = x
    for l in range(num_layers):
        h = _gat_conv_ref(h, layer_params[l], adj, jax.nn.elu).reshape(h.shape[0], -1)
    out = _gat_conv_ref(h, layer_params[-1], adj, None)
    return out.mean(axis=1)


# ---------------------------------------------------------------------------
if __name__ == "__main__":
    key = jax.random.PRNGKey(0)
    N, in_dim, num_hidden, num_classes = 512, 32, 16, 8
    heads = [4, 1]
    num_layers = 1

    k_adj, k_x, k_p = jax.random.split(key, 3)
    adj = (jax.random.uniform(k_adj, (N, N)) < 0.05).astype(jnp.float32)
    adj = jnp.maximum(adj, jnp.eye(N, dtype=jnp.float32))   # self-loops (DGL-style)
    x = jax.random.normal(k_x, (N, in_dim), jnp.float32)

    # Layer dims: (in_feats, num_heads, out_feats) per GATConv
    dims = []
    cur = in_dim
    for l in range(num_layers):
        dims.append((cur, heads[l], num_hidden))
        cur = heads[l] * num_hidden
    dims.append((cur, heads[-1], num_classes))

    params = []
    for fi, H, D in dims:
        k_w, k_al, k_ar, k_b, k_p = jax.random.split(k_p, 5)
        params.append(dict(
            W=0.1 * jax.random.normal(k_w, (fi, H * D), jnp.float32),
            attn_l=0.1 * jax.random.normal(k_al, (H, D), jnp.float32),
            attn_r=0.1 * jax.random.normal(k_ar, (H, D), jnp.float32),
            bias=0.1 * jax.random.normal(k_b, (H * D,), jnp.float32),
        ))

    logits = gat_forward(adj, x, params, num_layers)
    jax.block_until_ready(logits)

    ref = gat_forward_ref(adj, x, params, num_layers)
    assert logits.shape == (N, num_classes), logits.shape
    max_err = float(jnp.max(jnp.abs(logits - ref)))
    assert jnp.allclose(logits, ref, atol=3e-2, rtol=3e-2), max_err
    print("KERNEL_OK")
</pallas_src>

<mosaic_0001>
module attributes {stable_mosaic.version = 11 : i64} {
  func.func @_gat_project_kernel(%arg0: i32, %arg1: memref<256x32xf32, #tpu.memory_space<vmem>>, %arg2: memref<32x64xbf16, #tpu.memory_space<vmem>>, %arg3: memref<64x4xbf16, #tpu.memory_space<vmem>>, %arg4: memref<4x64xbf16, #tpu.memory_space<vmem>>, %arg5: memref<256x64xbf16, #tpu.memory_space<vmem>>, %arg6: memref<256x4xf32, #tpu.memory_space<vmem>>, %arg7: memref<4x256xf32, #tpu.memory_space<vmem>>) attributes {dimension_semantics = [#tpu.dimension_semantics<parallel>], iteration_bounds = array<i64: 2>, scalar_prefetch = 0 : i64, scratch_operands = 0 : i64, tpu.core_type = #tpu.core_type<tc>, window_params = [{transform_indices = @transform_0, window_bounds = array<i64: 256, 32>}, {pipeline_mode = #tpu.pipeline_mode<synchronous>, transform_indices = @transform_1, window_bounds = array<i64: 32, 64>}, {pipeline_mode = #tpu.pipeline_mode<synchronous>, transform_indices = @transform_2, window_bounds = array<i64: 64, 4>}, {pipeline_mode = #tpu.pipeline_mode<synchronous>, transform_indices = @transform_3, window_bounds = array<i64: 4, 64>}, {transform_indices = @transform_4, window_bounds = array<i64: 256, 64>}, {transform_indices = @transform_5, window_bounds = array<i64: 256, 4>}, {transform_indices = @transform_6, window_bounds = array<i64: 4, 256>}]} {
    %c0 = arith.constant 0 : index
    %c0_0 = arith.constant 0 : index
    %0 = vector.load %arg1[%c0, %c0_0] : memref<256x32xf32, #tpu.memory_space<vmem>>, vector<256x32xf32>
    %1 = arith.truncf %0 : vector<256x32xf32> to vector<256x32xbf16>
    %c0_1 = arith.constant 0 : index
    %c0_2 = arith.constant 0 : index
    %2 = vector.load %arg2[%c0_1, %c0_2] : memref<32x64xbf16, #tpu.memory_space<vmem>>, vector<32x64xbf16>
    %cst = arith.constant dense<0.000000e+00> : vector<256x64xf32>
    %3 = tpu.matmul %1, %2, %cst {dimension_numbers = #tpu.dot_dimension_numbers<[1], [0], [0], [1], [0, 0, 1, 1], [], []>} : vector<256x32xbf16>, vector<32x64xbf16>, vector<256x64xf32> -> vector<256x64xf32>
    %4 = arith.truncf %3 : vector<256x64xf32> to vector<256x64xbf16>
    %c0_3 = arith.constant 0 : index
    %c0_4 = arith.constant 0 : index
    %5 = vector.load %arg5[%c0_3, %c0_4] : memref<256x64xbf16, #tpu.memory_space<vmem>>, vector<256x64xbf16>
    tpu.vector_store %arg5[%c0_3, %c0_4], %4 {strides = array<i32>} : memref<256x64xbf16, #tpu.memory_space<vmem>>, vector<256x64xbf16>,
    %c0_5 = arith.constant 0 : index
    %c0_6 = arith.constant 0 : index
    %6 = vector.load %arg3[%c0_5, %c0_6] : memref<64x4xbf16, #tpu.memory_space<vmem>>, vector<64x4xbf16>
    %cst_7 = arith.constant dense<0.000000e+00> : vector<256x4xf32>
    %7 = tpu.matmul %4, %6, %cst_7 {dimension_numbers = #tpu.dot_dimension_numbers<[1], [0], [0], [1], [0, 0, 1, 1], [], []>} : vector<256x64xbf16>, vector<64x4xbf16>, vector<256x4xf32> -> vector<256x4xf32>
    %c0_8 = arith.constant 0 : index
    %c0_9 = arith.constant 0 : index
    %8 = vector.load %arg6[%c0_8, %c0_9] : memref<256x4xf32, #tpu.memory_space<vmem>>, vector<256x4xf32>
    tpu.vector_store %arg6[%c0_8, %c0_9], %7 {strides = array<i32>} : memref<256x4xf32, #tpu.memory_space<vmem>>, vector<256x4xf32>,
    %c0_10 = arith.constant 0 : index
    %c0_11 = arith.constant 0 : index
    %9 = vector.load %arg4[%c0_10, %c0_11] : memref<4x64xbf16, #tpu.memory_space<vmem>>, vector<4x64xbf16>
    %cst_12 = arith.constant dense<0.000000e+00> : vector<4x256xf32>
    %10 = tpu.matmul %9, %4, %cst_12 {dimension_numbers = #tpu.dot_dimension_numbers<[1], [1], [0], [0], [0, 0, 1, 0], [], []>} : vector<4x64xbf16>, vector<256x64xbf16>, vector<4x256xf32> -> vector<4x256xf32>
    %c0_13 = arith.constant 0 : index
    %c0_14 = arith.constant 0 : index
    %11 = vector.load %arg7[%c0_13, %c0_14] : memref<4x256xf32, #tpu.memory_space<vmem>>, vector<4x256xf32>
    tpu.vector_store %arg7[%c0_13, %c0_14], %10 {strides = array<i32>} : memref<4x256xf32, #tpu.memory_space<vmem>>, vector<4x256xf32>,
    return
  }
  func.func @transform_0(%arg0: i32) -> (i32, i32) {
    %c0_i32 = arith.constant 0 : i32
    %c0_i32_0 = arith.constant 0 : i32
    return %arg0, %c0_i32 : i32, i32
  }
  func.func @transform_1(%arg0: i32) -> (i32, i32) {
    %c0_i32 = arith.constant 0 : i32
    %c0_i32_0 = arith.constant 0 : i32
    %c0_i32_1 = arith.constant 0 : i32
    return %c0_i32, %c0_i32_0 : i32, i32
  }
  func.func @transform_2(%arg0: i32) -> (i32, i32) {
    %c0_i32 = arith.constant 0 : i32
    %c0_i32_0 = arith.constant 0 : i32
    %c0_i32_1 = arith.constant 0 : i32
    return %c0_i32, %c0_i32_0 : i32, i32
  }
  func.func @transform_3(%arg0: i32) -> (i32, i32) {
    %c0_i32 = arith.constant 0 : i32
    %c0_i32_0 = arith.constant 0 : i32
    %c0_i32_1 = arith.constant 0 : i32
    return %c0_i32, %c0_i32_0 : i32, i32
  }
  func.func @transform_4(%arg0: i32) -> (i32, i32) {
    %c0_i32 = arith.constant 0 : i32
    %c0_i32_0 = arith.constant 0 : i32
    return %arg0, %c0_i32 : i32, i32
  }
  func.func @transform_5(%arg0: i32) -> (i32, i32) {
    %c0_i32 = arith.constant 0 : i32
    %c0_i32_0 = arith.constant 0 : i32
    return %arg0, %c0_i32 : i32, i32
  }
  func.func @transform_6(%arg0: i32) -> (i32, i32) {
    %c0_i32 = arith.constant 0 : i32
    %c0_i32_0 = arith.constant 0 : i32
    return %c0_i32, %arg0 : i32, i32
  }
}

</mosaic_0001>

<bundles_post_ra>
// kernel: tpu_custom_call.1
= control target key start
LH: loop header
LB: loop body
LE: loop exit
PB: predicated region body
PF: predicated region fallthrough
CT: control target
= control target key end

     0   :  { %12 = vsyncpa [#allocation3], 0  ;;  %s1979_s0 = inlined_call_operand.vmem [shape: f32[512,32], index: 0, kind: input, shape index: {}]   ;;  %s1980_s1 = inlined_call_operand.vmem [shape: bf16[32,64], index: 1, kind: input, shape index: {}]   ;;  %s1981_s2 = inlined_call_operand.vmem [shape: bf16[64,4], index: 2, kind: input, shape index: {}]   ;;  %s1982_s3 = inlined_call_operand.vmem [shape: bf16[4,64], index: 3, kind: input, shape index: {}]   ;;  %s1983_s4 = inlined_call_operand.vmem [shape: bf16[512,64], index: 4, kind: output, shape index: {0}]   ;;  %s1984_s5 = inlined_call_operand.vmem [shape: f32[512,4], index: 5, kind: output, shape index: {1}]   ;;  %s1985_s6 = inlined_call_operand.hbm [shape: f32[4,512], index: 6, kind: output, shape index: {2}]  }
   0x1   :  { %14 = vsyncpa [#allocation3 + $0x1], 0  ;;  %s1586_s21 = smov 0   ;;  %s1588_s22 = smov 0  }
   0x2   :  { %s1590_s23 = smov 0   ;;  %s1592_s24 = smov 0  }
   0x3 LB: > { %s1607_s25 = sadd.s32 4294967295, %s1548_s24   ;;  %s1183_s26 = sadd.s32 4294967294, %s1548_s24   ;;  %s1548_s24 = sphi %s1592_s24, %s1991_s24   ;;  %s1544_s23 = sphi %s1590_s23, %s1990_s23   ;;  %s1540_s22 = sphi %s1588_s22, %s1989_s22   ;;  %s1536_s21 = sphi %s1586_s21, %s1988_s21  }
   0x4   : > { %s1611_s27 = sadd.s32 1, %s1548_s24   ;;  %s168_s28 = sadd.s32 1, %s1544_s23 }
   0x5   : > { %s165_s29 = ssub.s32 %s1548_s24, %s1611_s27  ;;  %p178_p0 = scmp.ne.s32.totalorder %s1544_s23, %s1540_s22 }
   0x6   : > { %p166_p1 = scmp.eq.s32.totalorder %s165_s29, 0  ;;  %p179_p2 = scmp.eq.s32.totalorder %s1607_s25, 1 }
   0x7   : > { %p184_p3 = scmp.ne.s32.totalorder %s1540_s22, %s1536_s21  ;;  %p185_p4 = scmp.eq.s32.totalorder %s1183_s26, 1 }
   0x8   : > { %s1622_s30 = scalar_select %p166_p1, %s1544_s23, %s168_s28  }
   0x9   : > { %p1624_p5 = por %p179_p2, %p178_p0  ;;  %p1628_p6 = por %p185_p4, %p184_p3 }
   0xa   : > { %p1186_p7 = scmp.ge.s32.totalorder %s1548_s24, 1  ;;  %p221_p8 = scmp.lt.s32.totalorder %s1548_s24, 3 }
   0xc   : > { %p222_p9 = pnand %p1186_p7, %p221_p8 }
   0xd   : > { %s1188_s11 = sshll.u32 (!%p222_p9), %s1607_s25, 5  ;;  %s1302_s28 = sshll.u32 (!%p222_p9), %s1607_s25, 7 }
   0xe   : > { %225 = sbr.rel (%p222_p9) target bundleno = 558 (0x22e), region = 36  ;;  %p262_p10 = scmp.lt.s32.totalorder (!%p222_p9), %s1188_s11, 63 }
   0xf   : > { %s1938_s13 = scalar_lea.hbm (!%p222_p9), %s1985_s6, %s1302_s28  ;;  %s1550_s25 = smov (!%p222_p9), [#allocation2]  }
  0x10   : > { %s1492_s16 = sshll.u32 (!%p222_p9), %s1550_s25, 4  ;;  %s1493_s16 = int_to_ptr.vmem [resolvable:$false] %s1492_s16 }
  0x13   : > { %v1482_v0 = vld [vmem:[%s1980_s1 + $0x8] sm:$0xff]   ;;  %v1483_v1 = vld [vmem:[%s1980_s1] sm:$0xff]   ;;  %v1484_v2 = vld [vmem:[%s1981_s2 + $0x18] sm:$0xff]   ;;  %s1993_s11 = smov (!%p262_p10, %s1188_s11), 63  ;;  %vm345_vm0 = vcmask 261120   ;;  %vm748_vm1 = vcmask 523264  }
  0x14   : > { %1359 = vmatprep.subr.bf16.mxu0 %v1482_v0  ;;  %v1485_v3 = vld [vmem:[%s1981_s2 + $0x10] sm:$0xff]   ;;  %1395 = vmatprep.subr.bf16.mxu1 %v1484_v2  ;;  %s1189_s18 = sshll.u32 %s1993_s11, 3  ;;  %v1486_v52 = vld [vmem:[%s1981_s2 + $0x8] sm:$0xff]   ;;  %v1487_v53 = vld [vmem:[%s1981_s2] sm:$0xff]   ;;  %s1191_s14 = sshll.u32 %s1993_s11, 2  ;;  %vm683_vm2 = vcmask 519168  }
  0x15   : > { %1360 = vmatpush3.bf16.msra.mxu0 %v1482_v0  ;;  %1396 = vmatpush3.bf16.msra.mxu1 %v1484_v2  ;;  %s1655_s26 = scalar_lea.vmem %s1979_s0, %s1189_s18  ;;  %v1714_v54 = vld [vmem:[%s1982_s3] sm:$0x3]  ;;  %s1722_s17 = scalar_lea.vmem %s1983_s4, %s1191_s14  ;;  %vm958_vm3 = vcmask 31744  }
  0x16   : > { %1361 = vmatprep.subr.bf16.mxu0 %v1483_v1  ;;  %1397 = vmatprep.subr.bf16.mxu1 %v1485_v3  ;;  %v281_v4 = vld [vmem:[%s1655_s26] sm:$0xff]  ;;  %v282_v5 = vld [vmem:[%s1655_s26 + $0x8] sm:$0xff]  ;;  %v283_v6 = vld [vmem:[%s1655_s26 + $0x10] sm:$0xff]  ;;  %s258_s11 = sand.u32 1, %s1540_s22  }
  0x17   : > { %v313_v7 = vpack.c.bf16 %v282_v5, %v281_v4  ;;  %v284_v8 = vld [vmem:[%s1655_s26 + $0x18] sm:$0xff]  ;;  %v285_v9 = vld [vmem:[%s1655_s26 + $0x20] sm:$0xff]  ;;  %v286_v10 = vld [vmem:[%s1655_s26 + $0x28] sm:$0xff]  ;;  %s1052_s14 = scalar_lea.sflag [#allocation3], %s258_s11 }
  0x18   : > { %v314_v11 = vpack.c.bf16 %v284_v8, %v283_v6  ;;  %v315_v12 = vpack.c.bf16 %v286_v10, %v285_v9  ;;  %v287_v13 = vld [vmem:[%s1655_s26 + $0x30] sm:$0xff]  ;;  %v288_v14 = vld [vmem:[%s1655_s26 + $0x38] sm:$0xff]  ;;  %v289_v15 = vld [vmem:[%s1655_s26 + $0x40] sm:$0xff] }
  0x19   : > { %1362 = vmatpush3.bf16.msra.mxu0 %v1483_v1  ;;  %1398 = vmatpush3.bf16.msra.mxu1 %v1485_v3  ;;  %v290_v16 = vld [vmem:[%s1655_s26 + $0x48] sm:$0xff]  ;;  %v316_v17 = vpack.c.bf16 %v288_v14, %v287_v13  ;;  %v291_v19 = vld [vmem:[%s1655_s26 + $0x50] sm:$0xff]  ;;  %v292_v20 = vld [vmem:[%s1655_s26 + $0x58] sm:$0xff] }
  0x1a   : > { %1363 = vmatprep.mubr.msk.bf16.mxu0 %vm345_vm0, %v313_v7  ;;  %v317_v18 = vpack.c.bf16 %v290_v16, %v289_v15  ;;  %v293_v21 = vld [vmem:[%s1655_s26 + $0x60] sm:$0xff]  ;;  %v294_v22 = vld [vmem:[%s1655_s26 + $0x68] sm:$0xff]  ;;  %v318_v23 = vpack.c.bf16 %v292_v20, %v291_v19  ;;  %v295_v25 = vld [vmem:[%s1655_s26 + $0x70] sm:$0xff]  ;;  %1399 = vmatprep.subr.bf16.mxu1 %v1486_v52 }
  0x1b   : > { %v319_v24 = vpack.c.bf16 %v294_v22, %v293_v21  ;;  %v296_v26 = vld [vmem:[%s1655_s26 + $0x78] sm:$0xff]  ;;  %v297_v27 = vld [vmem:[%s1655_s26 + $0x80] sm:$0xff]  ;;  %v298_v28 = vld [vmem:[%s1655_s26 + $0x88] sm:$0xff] }
  0x1c   : > { %1364 = vmatmul.mubr.msk.bf16.vlgmr.msra.gmra.mxu0 %vm345_vm0, %v314_v11  ;;  %v320_v29 = vpack.c.bf16 %v296_v26, %v295_v25  ;;  %v321_v30 = vpack.c.bf16 %v298_v28, %v297_v27  ;;  %v299_v31 = vld [vmem:[%s1655_s26 + $0x90] sm:$0xff]  ;;  %v300_v32 = vld [vmem:[%s1655_s26 + $0x98] sm:$0xff]  ;;  %v301_v33 = vld [vmem:[%s1655_s26 + $0xa0] sm:$0xff] }
  0x1d   : > { %1367 = vmatprep.mubr.msk.bf16.mxu0 %vm345_vm0, %v315_v12  ;;  %v302_v34 = vld [vmem:[%s1655_s26 + $0xa8] sm:$0xff]  ;;  %v322_v35 = vpack.c.bf16 %v300_v32, %v299_v31  ;;  %v303_v37 = vld [vmem:[%s1655_s26 + $0xb0] sm:$0xff]  ;;  %v304_v38 = vld [vmem:[%s1655_s26 + $0xb8] sm:$0xff]  ;;  %1400 = vmatpush3.bf16.msra.mxu1 %v1486_v52 }
  0x1e   : > { %v323_v36 = vpack.c.bf16 %v302_v34, %v301_v33  ;;  %v305_v39 = vld [vmem:[%s1655_s26 + $0xc0] sm:$0xff]  ;;  %v306_v40 = vld [vmem:[%s1655_s26 + $0xc8] sm:$0xff]  ;;  %v324_v41 = vpack.c.bf16 %v304_v38, %v303_v37  ;;  %v307_v43 = vld [vmem:[%s1655_s26 + $0xd0] sm:$0xff]  ;;  %1401 = vmatprep.subr.bf16.mxu1 %v1487_v53 }
  0x1f   : > { %v325_v42 = vpack.c.bf16 %v306_v40, %v305_v39  ;;  %v308_v44 = vld [vmem:[%s1655_s26 + $0xd8] sm:$0xff]  ;;  %v309_v45 = vld [vmem:[%s1655_s26 + $0xe0] sm:$0xff]  ;;  %v310_v46 = vld [vmem:[%s1655_s26 + $0xe8] sm:$0xff] }
  0x20   : > { %v326_v47 = vpack.c.bf16 %v308_v44, %v307_v43  ;;  %v327_v48 = vpack.c.bf16 %v310_v46, %v309_v45  ;;  %v311_v49 = vld [vmem:[%s1655_s26 + $0xf0] sm:$0xff]  ;;  %v312_v50 = vld [vmem:[%s1655_s26 + $0xf8] sm:$0xff]  ;;  %s1867_s26 = scalar_lea.vmem %s1984_s5, %s1189_s18  ;;  %s1187_s18 = sshll.u32 %s258_s11, 3 }
  0x21   : > { %v328_v51 = vpack.c.bf16 %v312_v50, %v311_v49  ;;  %1402 = vmatpush3.bf16.msra.mxu1 %v1487_v53  ;;  %s260_s29 = scalar_lea.vmem [#allocation2], %s1187_s18 }
  0x22   : > { %s1074_s9 = sshll.u32 %s260_s29, 4  ;;  %s1940_s9 = int_to_ptr.vmem [resolvable:$true] %s1074_s9 }
  0x23   : > { %s1488_s15 = scalar_lea.vmem %s1940_s9, 128  ;;  %p1495_p0 = scmp.lt.s32.totalorder %s1940_s9, %s1493_s16 }
  0x24   : > { %1368 = vmatmul.mubr.msk.bf16.gmra.mxu0 %vm345_vm0, %v316_v17  ;;  %p1489_p11 = scmp.ne.s32.totalorder %s1940_s9, %s1488_s15 }
  0x25   : > { %1371 = vmatprep.mubr.msk.bf16.mxu0 %vm345_vm0, %v317_v18 }
  0x26   : > { %p1490_p12 = pnand %p1489_p11, %p1624_p5 }
  0x28   : > { %p1491_p13 = pneg %p1490_p12 }
  0x2c   : > { %1372 = vmatmul.mubr.msk.bf16.gmra.mxu0 %vm345_vm0, %v318_v23 }
  0x2d   : > { %1375 = vmatprep.mubr.msk.bf16.mxu0 %vm345_vm0, %v319_v24 }
  0x34   : > { %1376 = vmatmul.mubr.msk.bf16.gmra.mxu0 %vm345_vm0, %v320_v29 }
  0x35   : > { %1379 = vmatprep.mubr.msk.bf16.mxu0 %vm345_vm0, %v321_v30 }
  0x3c   : > { %1380 = vmatmul.mubr.msk.bf16.gmra.mxu0 %vm345_vm0, %v322_v35 }
  0x3d   : > { %1383 = vmatprep.mubr.msk.bf16.mxu0 %vm345_vm0, %v323_v36 }
  0x44   : > { %1384 = vmatmul.mubr.msk.bf16.gmra.mxu0 %vm345_vm0, %v324_v41 }
  0x45   : > { %1387 = vmatprep.mubr.msk.bf16.mxu0 %vm345_vm0, %v325_v42 }
  0x4c   : > { %1388 = vmatmul.mubr.msk.bf16.gmra.mxu0 %vm345_vm0, %v326_v47 }
  0x4d   : > { %1391 = vmatprep.mubr.msk.bf16.mxu0 %vm345_vm0, %v327_v48 }
  0x54   : > { %1392 = vmatmul.mubr.msk.bf16.gmra.mxu0 %vm345_vm0, %v328_v51 }
  0x55   : > { %1357 = vmatprep.mubr.msk.bf16.mxu0 %vm748_vm1, %v1714_v54 }
  0xdc   : > { %v1365_v55 = vpop.f32.mrf.mxu0 }
  0xdd   : > { %v1272_v56 = vpack.c.bf16 %v1365_v55, %v1365_v55 }
  0xde   : > { %v428_v57 = vpop.f32.mrf.mxu0 }
  0xdf   : > { %686 = vst.msk [vmem:[%s1722_s17 + $0x8] sm:$0xf] %vm683_vm2, %v1272_v56  ;;  %v1270_v58 = vpack.c.bf16 %v428_v57, %v428_v57 }
  0xe0   : > { %v1366_v59 = vpop.f32.mrf.mxu0 }
  0xe1   : > { %684 = vst.msk [vmem:[%s1722_s17] sm:$0xf] %vm683_vm2, %v1270_v58  ;;  %v1273_v60 = vpack.c.bf16 %v1366_v59, %v1366_v59  ;;  %v1732_v0 = vpack.c.bf16 %v1366_v59, %v1365_v55 }
  0xe2   : > { %v431_v61 = vpop.f32.mrf.mxu0 }
  0xe3   : > { %687 = vst.msk [vmem:[%s1722_s17 + $0xc] sm:$0xf] %vm683_vm2, %v1273_v60  ;;  %v1271_v62 = vpack.c.bf16 %v431_v61, %v431_v61  ;;  %v1730_v63 = vpack.c.bf16 %v431_v61, %v428_v57 }
  0xe4   : > { %v1369_v1 = vpop.f32.mrf.mxu0 }
  0xe5   : > { %685 = vst.msk [vmem:[%s1722_s17 + $0x4] sm:$0xf] %vm683_vm2, %v1271_v62  ;;  %v1276_v2 = vpack.c.bf16 %v1369_v1, %v1369_v1  ;;  %1403 = vmatprep.mubr.msk.bf16.mxu1 %vm748_vm1, %v1730_v63 }
  0xe6   : > { %v444_v3 = vpop.f32.mrf.mxu0  ;;  %1404 = vmatmul.mubr.msk.bf16.vlgmr.msra.gmra.mxu1 %vm748_vm1, %v1732_v0 }
  0xe7   : > { %690 = vst.msk [vmem:[%s1722_s17 + $0x18] sm:$0xf] %vm683_vm2, %v1276_v2  ;;  %v1274_v4 = vpack.c.bf16 %v444_v3, %v444_v3 }
  0xe8   : > { %v1370_v5 = vpop.f32.mrf.mxu0 }
  0xe9   : > { %688 = vst.msk [vmem:[%s1722_s17 + $0x10] sm:$0xf] %vm683_vm2, %v1274_v4  ;;  %v1277_v6 = vpack.c.bf16 %v1370_v5, %v1370_v5  ;;  %v1748_v10 = vpack.c.bf16 %v1370_v5, %v1369_v1 }
  0xea   : > { %v447_v7 = vpop.f32.mrf.mxu0 }
  0xeb   : > { %691 = vst.msk [vmem:[%s1722_s17 + $0x1c] sm:$0xf] %vm683_vm2, %v1277_v6  ;;  %v1746_v8 = vpack.c.bf16 %v447_v7, %v444_v3  ;;  %v1275_v9 = vpack.c.bf16 %v447_v7, %v447_v7 }
  0xec   : > { %v1373_v11 = vpop.f32.mrf.mxu0 }
  0xed   : > { %689 = vst.msk [vmem:[%s1722_s17 + $0x14] sm:$0xf] %vm683_vm2, %v1275_v9  ;;  %v1280_v12 = vpack.c.bf16 %v1373_v11, %v1373_v11  ;;  %1407 = vmatprep.mubr.msk.bf16.mxu1 %vm748_vm1, %v1746_v8 }
  0xee   : > { %v460_v13 = vpop.f32.mrf.mxu0  ;;  %1408 = vmatmul.mubr.msk.bf16.gmra.mxu1 %vm748_vm1, %v1748_v10 }
  0xef   : > { %694 = vst.msk [vmem:[%s1722_s17 + $0x28] sm:$0xf] %vm683_vm2, %v1280_v12  ;;  %v1278_v14 = vpack.c.bf16 %v460_v13, %v460_v13 }
  0xf0   : > { %v1374_v15 = vpop.f32.mrf.mxu0 }
  0xf1   : > { %692 = vst.msk [vmem:[%s1722_s17 + $0x20] sm:$0xf] %vm683_vm2, %v1278_v14  ;;  %v1281_v16 = vpack.c.bf16 %v1374_v15, %v1374_v15  ;;  %v1764_v20 = vpack.c.bf16 %v1374_v15, %v1373_v11 }
  0xf2   : > { %v463_v17 = vpop.f32.mrf.mxu0 }
  0xf3   : > { %695 = vst.msk [vmem:[%s1722_s17 + $0x2c] sm:$0xf] %vm683_vm2, %v1281_v16  ;;  %v1762_v18 = vpack.c.bf16 %v463_v17, %v460_v13  ;;  %v1279_v19 = vpack.c.bf16 %v463_v17, %v463_v17  ;;  %v765_v14 = vsel %vm748_vm1, %v1764_v20, 0  ;;  %v759_v16 = vsel %vm748_vm1, %v1748_v10, 0 }
  0xf4   : > { %v1377_v21 = vpop.f32.mrf.mxu0  ;;  %v756_v17 = vsel %vm748_vm1, %v1746_v8, 0  ;;  %v750_v10 = vsel %vm748_vm1, %v1730_v63, 0 }
  0xf5   : > { %693 = vst.msk [vmem:[%s1722_s17 + $0x24] sm:$0xf] %vm683_vm2, %v1279_v19  ;;  %v1284_v22 = vpack.c.bf16 %v1377_v21, %v1377_v21  ;;  %1411 = vmatprep.mubr.msk.bf16.mxu1 %vm748_vm1, %v1762_v18  ;;  %v762_v15 = vsel %vm748_vm1, %v1762_v18, 0  ;;  %v753_v19 = vsel %vm748_vm1, %v1732_v0, 0 }
  0xf6   : > { %v476_v23 = vpop.f32.mrf.mxu0  ;;  %1412 = vmatmul.mubr.msk.bf16.gmra.mxu1 %vm748_vm1, %v1764_v20 }
  0xf7   : > { %698 = vst.msk [vmem:[%s1722_s17 + $0x38] sm:$0xf] %vm683_vm2, %v1284_v22  ;;  %v1282_v24 = vpack.c.bf16 %v476_v23, %v476_v23 }
  0xf8   : > { %v1378_v25 = vpop.f32.mrf.mxu0 }
  0xf9   : > { %696 = vst.msk [vmem:[%s1722_s17 + $0x30] sm:$0xf] %vm683_vm2, %v1282_v24  ;;  %v1285_v26 = vpack.c.bf16 %v1378_v25, %v1378_v25  ;;  %v1780_v30 = vpack.c.bf16 %v1378_v25, %v1377_v21 }
  0xfa   : > { %v479_v27 = vpop.f32.mrf.mxu0 }
  0xfb   : > { %699 = vst.msk [vmem:[%s1722_s17 + $0x3c] sm:$0xf] %vm683_vm2, %v1285_v26  ;;  %v1778_v28 = vpack.c.bf16 %v479_v27, %v476_v23  ;;  %v1283_v29 = vpack.c.bf16 %v479_v27, %v479_v27  ;;  %v771_v12 = vsel %vm748_vm1, %v1780_v30, 0 }
  0xfc   : > { %v1381_v31 = vpop.f32.mrf.mxu0 }
  0xfd   : > { %697 = vst.msk [vmem:[%s1722_s17 + $0x34] sm:$0xf] %vm683_vm2, %v1283_v29  ;;  %v1288_v32 = vpack.c.bf16 %v1381_v31, %v1381_v31  ;;  %1415 = vmatprep.mubr.msk.bf16.mxu1 %vm748_vm1, %v1778_v28  ;;  %v768_v13 = vsel %vm748_vm1, %v1778_v28, 0 }
  0xfe   : > { %v492_v33 = vpop.f32.mrf.mxu0  ;;  %1416 = vmatmul.mubr.msk.bf16.gmra.mxu1 %vm748_vm1, %v1780_v30 }
  0xff   : > { %702 = vst.msk [vmem:[%s1722_s17 + $0x48] sm:$0xf] %vm683_vm2, %v1288_v32  ;;  %v1286_v34 = vpack.c.bf16 %v492_v33, %v492_v33 }
 0x100   : > { %v1382_v35 = vpop.f32.mrf.mxu0 }
 0x101   : > { %700 = vst.msk [vmem:[%s1722_s17 + $0x40] sm:$0xf] %vm683_vm2, %v1286_v34  ;;  %v1289_v36 = vpack.c.bf16 %v1382_v35, %v1382_v35  ;;  %v1796_v40 = vpack.c.bf16 %v1382_v35, %v1381_v31 }
 0x102   : > { %v495_v37 = vpop.f32.mrf.mxu0 }
 0x103   : > { %703 = vst.msk [vmem:[%s1722_s17 + $0x4c] sm:$0xf] %vm683_vm2, %v1289_v36  ;;  %v1794_v38 = vpack.c.bf16 %v495_v37, %v492_v33  ;;  %v1287_v39 = vpack.c.bf16 %v495_v37, %v495_v37 }
 0x104   : > { %v1385_v41 = vpop.f32.mrf.mxu0 }
 0x105   : > { %701 = vst.msk [vmem:[%s1722_s17 + $0x44] sm:$0xf] %vm683_vm2, %v1287_v39  ;;  %v1292_v42 = vpack.c.bf16 %v1385_v41, %v1385_v41  ;;  %1419 = vmatprep.mubr.msk.bf16.mxu1 %vm748_vm1, %v1794_v38 }
 0x106   : > { %v508_v43 = vpop.f32.mrf.mxu0  ;;  %1420 = vmatmul.mubr.msk.bf16.gmra.mxu1 %vm748_vm1, %v1796_v40 }
 0x107   : > { %706 = vst.msk [vmem:[%s1722_s17 + $0x58] sm:$0xf] %vm683_vm2, %v1292_v42  ;;  %v1290_v44 = vpack.c.bf16 %v508_v43, %v508_v43 }
 0x108   : > { %v1386_v45 = vpop.f32.mrf.mxu0 }
 0x109   : > { %704 = vst.msk [vmem:[%s1722_s17 + $0x50] sm:$0xf] %vm683_vm2, %v1290_v44  ;;  %v1293_v46 = vpack.c.bf16 %v1386_v45, %v1386_v45  ;;  %v566_v50 = vpack.c.bf16 %v1386_v45, %v1385_v41 }
 0x10a   : > { %v511_v47 = vpop.f32.mrf.mxu0 }
 0x10b   : > { %707 = vst.msk [vmem:[%s1722_s17 + $0x5c] sm:$0xf] %vm683_vm2, %v1293_v46  ;;  %v565_v48 = vpack.c.bf16 %v511_v47, %v508_v43  ;;  %v1291_v49 = vpack.c.bf16 %v511_v47, %v511_v47 }
 0x10c   : > { %v1389_v51 = vpop.f32.mrf.mxu0 }
 0x10d   : > { %705 = vst.msk [vmem:[%s1722_s17 + $0x54] sm:$0xf] %vm683_vm2, %v1291_v49  ;;  %v1296_v52 = vpack.c.bf16 %v1389_v51, %v1389_v51  ;;  %1423 = vmatprep.mubr.msk.bf16.mxu1 %vm748_vm1, %v565_v48 }
 0x10e   : > { %v524_v53 = vpop.f32.mrf.mxu0  ;;  %1424 = vmatmul.mubr.msk.bf16.gmra.mxu1 %vm748_vm1, %v566_v50 }
 0x10f   : > { %710 = vst.msk [vmem:[%s1722_s17 + $0x68] sm:$0xf] %vm683_vm2, %v1296_v52  ;;  %v1294_v55 = vpack.c.bf16 %v524_v53, %v524_v53 }
 0x110   : > { %v1390_v56 = vpop.f32.mrf.mxu0 }
 0x111   : > { %708 = vst.msk [vmem:[%s1722_s17 + $0x60] sm:$0xf] %vm683_vm2, %v1294_v55  ;;  %v1297_v57 = vpack.c.bf16 %v1390_v56, %v1390_v56  ;;  %v568_v61 = vpack.c.bf16 %v1390_v56, %v1389_v51 }
 0x112   : > { %v527_v58 = vpop.f32.mrf.mxu0 }
 0x113   : > { %711 = vst.msk [vmem:[%s1722_s17 + $0x6c] sm:$0xf] %vm683_vm2, %v1297_v57  ;;  %v567_v59 = vpack.c.bf16 %v527_v58, %v524_v53  ;;  %v1295_v60 = vpack.c.bf16 %v527_v58, %v527_v58 }
 0x114   : > { %v1393_v62 = vpop.f32.mrf.mxu0 }
 0x115   : > { %709 = vst.msk [vmem:[%s1722_s17 + $0x64] sm:$0xf] %vm683_vm2, %v1295_v60  ;;  %v1300_v1 = vpack.c.bf16 %v1393_v62, %v1393_v62  ;;  %1427 = vmatprep.mubr.msk.bf16.mxu1 %vm748_vm1, %v567_v59 }
 0x116   : > { %v540_v2 = vpop.f32.mrf.mxu0  ;;  %1428 = vmatmul.mubr.msk.bf16.gmra.mxu1 %vm748_vm1, %v568_v61 }
 0x117   : > { %714 = vst.msk [vmem:[%s1722_s17 + $0x78] sm:$0xf] %vm683_vm2, %v1300_v1  ;;  %v1298_v3 = vpack.c.bf16 %v540_v2, %v540_v2 }
 0x118   : > { %v1394_v4 = vpop.f32.mrf.mxu0 }
 0x119   : > { %712 = vst.msk [vmem:[%s1722_s17 + $0x70] sm:$0xf] %vm683_vm2, %v1298_v3  ;;  %v570_v5 = vpack.c.bf16 %v1394_v4, %v1393_v62  ;;  %v1301_v6 = vpack.c.bf16 %v1394_v4, %v1394_v4 }
 0x11a   : > { %v543_v7 = vpop.f32.mrf.mxu0 }
 0x11b   : > { %715 = vst.msk [vmem:[%s1722_s17 + $0x7c] sm:$0xf] %vm683_vm2, %v1301_v6  ;;  %v569_v9 = vpack.c.bf16 %v543_v7, %v540_v2  ;;  %v1299_v11 = vpack.c.bf16 %v543_v7, %v543_v7  ;;  %1435 = vmatprep.subr.msk.bf16.mxu0 %vm748_vm1, %v570_v5 }
 0x11c   : > { %1342 = vmatpush3.bf16.xpose.msra.mxu0 %v771_v12 }
 0x11d   : > { %713 = vst.msk [vmem:[%s1722_s17 + $0x74] sm:$0xf] %vm683_vm2, %v1299_v11  ;;  %1431 = vmatprep.mubr.msk.bf16.mxu1 %vm748_vm1, %v569_v9  ;;  %1436 = vmatprep.subr.msk.bf16.mxu0 %vm748_vm1, %v569_v9  ;;  %s1494_s17 = scalar_lea.vmem %s1493_s16, 256 }
 0x11e   : > { %1432 = vmatmul.mubr.msk.bf16.gmra.mxu1 %vm748_vm1, %v570_v5  ;;  %p1496_p1 = scmp.lt.s32.totalorder %s1494_s17, %s1488_s15 }
 0x120   : > { %p1497_p2 = por %p1496_p1, %p1495_p0 }
 0x122   : > { %p1498_p3 = pnand %p1497_p2, %p1491_p13 }
 0x124   : > { %1344 = vmatpush3.bf16.xpose.msra.mxu0 %v768_v13 }
 0x125   : > { %1437 = vmatprep.subr.msk.bf16.mxu0 %vm748_vm1, %v568_v61 }
 0x12c   : > { %1346 = vmatpush3.bf16.xpose.msra.mxu0 %v765_v14 }
 0x12d   : > { %1438 = vmatprep.subr.msk.bf16.mxu0 %vm748_vm1, %v567_v59 }
 0x134   : > { %1348 = vmatpush3.bf16.xpose.msra.mxu0 %v762_v15 }
 0x135   : > { %1439 = vmatprep.subr.msk.bf16.mxu0 %vm748_vm1, %v566_v50 }
 0x13c   : > { %1350 = vmatpush3.bf16.xpose.msra.mxu0 %v759_v16 }
 0x13d   : > { %1440 = vmatprep.subr.msk.bf16.mxu0 %vm748_vm1, %v565_v48 }
 0x144   : > { %1352 = vmatpush3.bf16.xpose.msra.mxu0 %v756_v17 }
 0x145   : > { %1441 = vmatprep.subr.msk.bf16.mxu0 %vm748_vm1, %v1796_v40 }
 0x14c   : > { %1354 = vmatpush3.bf16.xpose.msra.mxu0 %v753_v19 }
 0x14d   : > { %1442 = vmatprep.subr.msk.bf16.mxu0 %vm748_vm1, %v1794_v38 }
 0x154   : > { %1356 = vmatpush3.bf16.xpose.msra.mxu0 %v750_v10 }
 0x15b   : > { %1358 = vmatmul.mubr.msk.bf16.vlgmr.msra.gmra.mxu0 %vm748_vm1, %v1714_v54 }
 0x1a6   : > { %v1405_v63 = vpop.f32.mrf.mxu1 }
 0x1a7   : > { %961 = vst.msk [vmem:[%s1867_s26 + $0x10] sm:$0xff] %vm958_vm3, %v1405_v63 }
 0x1a8   : > { %v831_v54 = vpop.f32.mrf.mxu1 }
 0x1a9   : > { %959 = vst.msk [vmem:[%s1867_s26] sm:$0xff] %vm958_vm3, %v831_v54 }
 0x1aa   : > { %v1406_v0 = vpop.f32.mrf.mxu1 }
 0x1ab   : > { %962 = vst.msk [vmem:[%s1867_s26 + $0x18] sm:$0xff] %vm958_vm3, %v1406_v0 }
 0x1ac   : > { %v834_v8 = vpop.f32.mrf.mxu1 }
 0x1ad   : > { %960 = vst.msk [vmem:[%s1867_s26 + $0x8] sm:$0xff] %vm958_vm3, %v834_v8 }
 0x1ae   : > { %v1409_v18 = vpop.f32.mrf.mxu1 }
 0x1af   : > { %965 = vst.msk [vmem:[%s1867_s26 + $0x30] sm:$0xff] %vm958_vm3, %v1409_v18 }
 0x1b0   : > { %v847_v20 = vpop.f32.mrf.mxu1 }
 0x1b1   : > { %963 = vst.msk [vmem:[%s1867_s26 + $0x20] sm:$0xff] %vm958_vm3, %v847_v20 }
 0x1b2   : > { %v1410_v21 = vpop.f32.mrf.mxu1 }
 0x1b3   : > { %966 = vst.msk [vmem:[%s1867_s26 + $0x38] sm:$0xff] %vm958_vm3, %v1410_v21 }
 0x1b4   : > { %v850_v22 = vpop.f32.mrf.mxu1 }
 0x1b5   : > { %964 = vst.msk [vmem:[%s1867_s26 + $0x28] sm:$0xff] %vm958_vm3, %v850_v22 }
 0x1b6   : > { %v1413_v23 = vpop.f32.mrf.mxu1 }
 0x1b7   : > { %969 = vst.msk [vmem:[%s1867_s26 + $0x50] sm:$0xff] %vm958_vm3, %v1413_v23 }
 0x1b8   : > { %v863_v24 = vpop.f32.mrf.mxu1 }
 0x1b9   : > { %967 = vst.msk [vmem:[%s1867_s26 + $0x40] sm:$0xff] %vm958_vm3, %v863_v24 }
 0x1ba   : > { %v1414_v25 = vpop.f32.mrf.mxu1 }
 0x1bb   : > { %970 = vst.msk [vmem:[%s1867_s26 + $0x58] sm:$0xff] %vm958_vm3, %v1414_v25 }
 0x1bc   : > { %v866_v26 = vpop.f32.mrf.mxu1 }
 0x1bd   : > { %968 = vst.msk [vmem:[%s1867_s26 + $0x48] sm:$0xff] %vm958_vm3, %v866_v26 }
 0x1be   : > { %v1417_v27 = vpop.f32.mrf.mxu1 }
 0x1bf   : > { %973 = vst.msk [vmem:[%s1867_s26 + $0x70] sm:$0xff] %vm958_vm3, %v1417_v27 }
 0x1c0   : > { %v879_v28 = vpop.f32.mrf.mxu1 }
 0x1c1   : > { %971 = vst.msk [vmem:[%s1867_s26 + $0x60] sm:$0xff] %vm958_vm3, %v879_v28 }
 0x1c2   : > { %v1418_v29 = vpop.f32.mrf.mxu1 }
 0x1c3   : > { %974 = vst.msk [vmem:[%s1867_s26 + $0x78] sm:$0xff] %vm958_vm3, %v1418_v29 }
 0x1c4   : > { %v882_v30 = vpop.f32.mrf.mxu1 }
 0x1c5   : > { %972 = vst.msk [vmem:[%s1867_s26 + $0x68] sm:$0xff] %vm958_vm3, %v882_v30 }
 0x1c6   : > { %v1421_v31 = vpop.f32.mrf.mxu1 }
 0x1c7   : > { %977 = vst.msk [vmem:[%s1867_s26 + $0x90] sm:$0xff] %vm958_vm3, %v1421_v31 }
 0x1c8   : > { %v895_v32 = vpop.f32.mrf.mxu1 }
 0x1c9   : > { %975 = vst.msk [vmem:[%s1867_s26 + $0x80] sm:$0xff] %vm958_vm3, %v895_v32 }
 0x1ca   : > { %v1422_v33 = vpop.f32.mrf.mxu1 }
 0x1cb   : > { %978 = vst.msk [vmem:[%s1867_s26 + $0x98] sm:$0xff] %vm958_vm3, %v1422_v33 }
 0x1cc   : > { %v898_v34 = vpop.f32.mrf.mxu1 }
 0x1cd   : > { %976 = vst.msk [vmem:[%s1867_s26 + $0x88] sm:$0xff] %vm958_vm3, %v898_v34 }
 0x1ce   : > { %v1425_v35 = vpop.f32.mrf.mxu1 }
 0x1cf   : > { %981 = vst.msk [vmem:[%s1867_s26 + $0xb0] sm:$0xff] %vm958_vm3, %v1425_v35 }
 0x1d0   : > { %v911_v36 = vpop.f32.mrf.mxu1 }
 0x1d1   : > { %979 = vst.msk [vmem:[%s1867_s26 + $0xa0] sm:$0xff] %vm958_vm3, %v911_v36 }
 0x1d2   : > { %v1426_v37 = vpop.f32.mrf.mxu1 }
 0x1d3   : > { %982 = vst.msk [vmem:[%s1867_s26 + $0xb8] sm:$0xff] %vm958_vm3, %v1426_v37 }
 0x1d4   : > { %v914_v38 = vpop.f32.mrf.mxu1 }
 0x1d5   : > { %980 = vst.msk [vmem:[%s1867_s26 + $0xa8] sm:$0xff] %vm958_vm3, %v914_v38 }
 0x1d6   : > { %v1429_v39 = vpop.f32.mrf.mxu1 }
 0x1d7   : > { %985 = vst.msk [vmem:[%s1867_s26 + $0xd0] sm:$0xff] %vm958_vm3, %v1429_v39 }
 0x1d8   : > { %v927_v40 = vpop.f32.mrf.mxu1 }
 0x1d9   : > { %983 = vst.msk [vmem:[%s1867_s26 + $0xc0] sm:$0xff] %vm958_vm3, %v927_v40 }
 0x1da   : > { %v1430_v41 = vpop.f32.mrf.mxu1 }
 0x1db   : > { %986 = vst.msk [vmem:[%s1867_s26 + $0xd8] sm:$0xff] %vm958_vm3, %v1430_v41 }
 0x1dc   : > { %v930_v42 = vpop.f32.mrf.mxu1 }
 0x1dd   : > { %984 = vst.msk [vmem:[%s1867_s26 + $0xc8] sm:$0xff] %vm958_vm3, %v930_v42 }
 0x1de   : > { %v1433_v43 = vpop.f32.mrf.mxu1 }
 0x1df   : > { %989 = vst.msk [vmem:[%s1867_s26 + $0xf0] sm:$0xff] %vm958_vm3, %v1433_v43 }
 0x1e0   : > { %v943_v44 = vpop.f32.mrf.mxu1 }
 0x1e1   : > { %987 = vst.msk [vmem:[%s1867_s26 + $0xe0] sm:$0xff] %vm958_vm3, %v943_v44 }
 0x1e2   : > { %v1434_v45 = vpop.f32.mrf.mxu1 }
 0x1e3   : > { %990 = vst.msk [vmem:[%s1867_s26 + $0xf8] sm:$0xff] %vm958_vm3, %v1434_v45 }
 0x1e4   : > { %v946_v46 = vpop.f32.mrf.mxu1 }
 0x1e5   : > { %988 = vst.msk [vmem:[%s1867_s26 + $0xe8] sm:$0xff] %vm958_vm3, %v946_v46 }
 0x21b   : > { %v1029_v47 = vpop.f32.mrf.mxu0 }
 0x21d   : > { %v1031_v48 = vpop.f32.mrf.mxu0 }
 0x21e   : > { %v1038_v49 = vcombine.low %v1029_v47, %v1031_v48 }
 0x21f   : > { %v1033_v50 = vpop.f32.mrf.mxu0 }
 0x220   : > { %1040 = vst [vmem:[%s260_s29] sm:$0xff] %v1038_v49 }
 0x221   : > { %v1034_v51 = vpop.f32.mrf.mxu0 }
 0x222   : > { %1501 = shalt.err (!%p1498_p3)
}
 0x223   : > { %s1502_s19 = scalar_lea.hbm %s1938_s13, 128  ;;  %s1506_s11 = scalar_lea.hbm %s1985_s6, 256 }
 0x224   : > { %p1503_p4 = scmp.ne.s32.totalorder %s1938_s13, %s1502_s19  ;;  %p1507_p9 = scmp.lt.s32.totalorder %s1938_s13, %s1985_s6 }
 0x225   : > { %p1508_p10 = scmp.lt.s32.totalorder %s1506_s11, %s1502_s19 }
 0x226   : > { %p1504_p7 = pnand %p1503_p4, %p1624_p5 }
 0x227   : > { %p1509_p11 = por %p1508_p10, %p1507_p9 }
 0x228   : > { %p1505_p8 = pneg %p1504_p7 }
 0x22a   : > { %p1510_p12 = pnand %p1509_p11, %p1505_p8 }
 0x22c   : > { %1513 = shalt.err (!%p1510_p12)
}
 0x22d   : > { %1443 = dma.vmem_to_hbm [thread:$0]  (%p1624_p5), %s1940_s9, 128, %s1938_s13, %s1052_s14  }
 0x22e PF: > { %p1449_p13 = scmp.ge.s32.totalorder %s1548_s24, 2  ;;  %s1102_s29 = sand.u32 1, %s1536_s21  }
 0x22f   : > { %s1103_s10 = scalar_lea.sflag [#allocation3], %s1102_s29 }
 0x230   : > { %p1446_p0 = pnand %p1449_p13, %p1628_p6 }
 0x232   : > { %p1447_p1 = pneg %p1446_p0 }
 0x234   : > { %1531 = dma.done.wait (%p1447_p1), %s1103_s10, 128  }
 0x235   : > { %1533 = vsyncadd (%p1447_p1), %s1103_s10, 4294967168  ;;  %p17_p2 = scmp.ge.s32.totalorder %s1611_s27, 4   ;;  %s1988_s21 = smov %s1540_s22 }
 0x236   : > { %s1989_s22 = smov %s1544_s23  ;;  %s1990_s23 = smov %s1622_s30 }
 0x237   : > { %s1991_s24 = smov %s1611_s27  ;;  %19 = sbr.rel (!%p17_p2) target bundleno = 3 (0x3), region = 95 }
 0x23c   :  { %1108 = vsyncpa [#allocation3], 1 }
 0x23d   :  { %1110 = vsyncpa [#allocation3 + $0x1], 1 }

</bundles_post_ra>
